<compile_context>
chip_gen: v6e
topology: v6e:2x2x1
jax: 0.10.0
libtpu: 0.0.40
codegen_flags: <defaults>
</compile_context>

<pallas_src>
import jax
import jax.numpy as jnp
from jax.experimental import pallas as pl
from jax.experimental.pallas import tpu as pltpu


def linear_sigmoid_kernel(w_ref, b_ref, x_ref, o_ref):
    """Fused Linear(2,2) + sigmoid on a feature-interleaved lane layout.

    x_ref / o_ref: VMEM (TR, 128) f32. Lane 2k holds feature 0 of a sample,
                   lane 2k+1 holds feature 1 of the *same* sample; the output
                   keeps that interleaving (even lanes = y[:,0], odd = y[:,1]).
    w_ref: SMEM (2, 2)  (PyTorch layout: out_features x in_features)
    b_ref: SMEM (2,)
    """
    x = x_ref[...]                                   # one dense load, reused for both features
    _, lanes = x.shape

    lane = jax.lax.broadcasted_iota(jnp.int32, x.shape, 1)
    partner_lane = lane ^ 1                          # lane holding the sample's other feature
    is_even = (lane & 1) == 0

    # Pair-partner value via lane rotations (XLU slot, free next to the VPU work).
    # Selecting with a rolled iota makes this independent of the rotate-direction
    # convention: per lane we keep whichever rotation delivered lane^1 here.
    rolled_a = pltpu.roll(x, 1, axis=1)
    rolled_b = pltpu.roll(x, lanes - 1, axis=1)
    rolled_a_idx = pltpu.roll(lane, 1, axis=1)
    partner = jnp.where(rolled_a_idx == partner_lane, rolled_a, rolled_b)

    # Lane-periodic weights / bias built once from the 4 SMEM scalars.
    w_self = jnp.where(is_even, w_ref[0, 0], w_ref[1, 1])    # multiplies the lane's own feature
    w_other = jnp.where(is_even, w_ref[0, 1], w_ref[1, 0])   # multiplies the partner feature
    b_lane = jnp.where(is_even, b_ref[0], b_ref[1])

    z = w_self * x + w_other * partner + b_lane
    # sigmoid(z) = 0.5 * tanh(0.5 * z) + 0.5  -> a single (exact) EUP op per element.
    o_ref[...] = (0.5 * jnp.tanh(0.5 * z) + 0.5).astype(o_ref.dtype)


def net_forward(x, weight, bias, *, max_tile_rows=1024):
    """y = sigmoid(x @ weight.T + bias).

    x: (N, 2) f32 (row-major), weight: (2, 2) (PyTorch layout), bias: (2,).
    """
    n, f_in = x.shape
    f_out = weight.shape[0]
    assert f_in == 2 and f_out == 2, "kernel is specialized to nn.Linear(2, 2)"

    lanes = 128
    samples_per_row = lanes // f_in                  # 64 samples per 128-lane row
    rows = pl.cdiv(n, samples_per_row)
    # One grid step at this problem size; only tile (multiple-of-8 rows, so the
    # (8,128) block constraint holds) if the batch grows very large.  A 1024-row
    # tile is 512 KB -> double-buffered in+out ~2 MB, safe on v5e/v6e/v7x VMEM.
    tile_rows = min(max_tile_rows, pl.cdiv(rows, 8) * 8)
    total_rows = pl.cdiv(rows, tile_rows) * tile_rows

    # Flat pad + reshape only (no transpose): keeps the natural feature
    # interleave of row-major (N, 2) data on the lane axis.
    flat = jnp.zeros((total_rows * lanes,), x.dtype).at[: n * f_in].set(x.reshape(-1))
    x_slab = flat.reshape(total_rows, lanes)

    out_slab = pl.pallas_call(
        linear_sigmoid_kernel,
        out_shape=jax.ShapeDtypeStruct((total_rows, lanes), x.dtype),
        grid=(total_rows // tile_rows,),
        in_specs=[
            # Tiny params: whole-array SMEM residents (scalar reads in-kernel).
            pl.BlockSpec(memory_space=pltpu.MemorySpace.SMEM),
            pl.BlockSpec(memory_space=pltpu.MemorySpace.SMEM),
            # Sublane+lane dense activation slab, tiled along rows.
            pl.BlockSpec((tile_rows, lanes), lambda i: (i, 0)),
        ],
        out_specs=pl.BlockSpec((tile_rows, lanes), lambda i: (i, 0)),
        compiler_params=pltpu.CompilerParams(
            dimension_semantics=("arbitrary",)),      # grid=(1,) here; no megacore assumption
    )(weight, bias, x_slab)

    # Output slab is already in interleaved (N, 2) order: cheap reshape + slice.
    return out_slab.reshape(total_rows * samples_per_row, f_out)[:n]


def reference_forward(x, weight, bias):
    return jax.nn.sigmoid(x @ weight.T + bias)


if __name__ == "__main__":
    key = jax.random.PRNGKey(0)
    k0, k1, kw, kb = jax.random.split(key, 4)

    # Mirror the module's data: 500 points ~ N(+4, 2) and 500 ~ N(-4, 2), 2 features.
    N_PER, F_IN, F_OUT = 500, 2, 2
    data0 = 4.0 + 2.0 * jax.random.normal(k0, (N_PER, F_IN), dtype=jnp.float32)
    data1 = -4.0 + 2.0 * jax.random.normal(k1, (N_PER, F_IN), dtype=jnp.float32)
    x = jnp.concatenate([data0, data1], axis=0)          # (1000, 2)

    # nn.Linear(2, 2)-style init: uniform(-1/sqrt(fan_in), 1/sqrt(fan_in)).
    bound = 1.0 / jnp.sqrt(jnp.float32(F_IN))
    weight = jax.random.uniform(kw, (F_OUT, F_IN), dtype=jnp.float32,
                                minval=-bound, maxval=bound)
    bias = jax.random.uniform(kb, (F_OUT,), dtype=jnp.float32,
                              minval=-bound, maxval=bound)

    fwd = jax.jit(net_forward)
    out = jax.block_until_ready(fwd(x, weight, bias))

    ref = reference_forward(x, weight, bias)
    assert out.shape == (2 * N_PER, F_OUT)
    # Exact tanh-form sigmoid -> tight tolerance (only EUP tanh rounding).
    assert jnp.allclose(out, ref, atol=1e-5, rtol=1e-5), "mismatch vs reference"

    print("KERNEL_OK")
</pallas_src>

<mosaic_0001>
module attributes {stable_mosaic.version = 11 : i64} {
  func.func @linear_sigmoid_kernel(%arg0: i32, %arg1: memref<2x2xf32, #tpu.memory_space<smem>>, %arg2: memref<2xf32, #tpu.memory_space<smem>>, %arg3: memref<16x128xf32, #tpu.memory_space<vmem>>, %arg4: memref<16x128xf32, #tpu.memory_space<vmem>>) attributes {dimension_semantics = [#tpu.dimension_semantics<arbitrary>], iteration_bounds = array<i64: 1>, scalar_prefetch = 0 : i64, scratch_operands = 0 : i64, tpu.core_type = #tpu.core_type<tc>, window_params = [{transform_indices = @transform_0, window_bounds = array<i64: 2, 2>}, {transform_indices = @transform_1, window_bounds = array<i64: 2>}, {transform_indices = @transform_2, window_bounds = array<i64: 16, 128>}, {transform_indices = @transform_3, window_bounds = array<i64: 16, 128>}]} {
    %c0 = arith.constant 0 : index
    %c0_0 = arith.constant 0 : index
    %0 = vector.load %arg3[%c0, %c0_0] : memref<16x128xf32, #tpu.memory_space<vmem>>, vector<16x128xf32>
    %1 = tpu.iota {dimensions = array<i32: 1>} : vector<16x128xi32>
    %c1_i32 = arith.constant 1 : i32
    %2 = vector.broadcast %c1_i32 : i32 to vector<16x128xi32>
    %3 = arith.xori %1, %2 : vector<16x128xi32>
    %c1_i32_1 = arith.constant 1 : i32
    %4 = vector.broadcast %c1_i32_1 : i32 to vector<16x128xi32>
    %5 = arith.andi %1, %4 : vector<16x128xi32>
    %c0_i32 = arith.constant 0 : i32
    %6 = vector.broadcast %c0_i32 : i32 to vector<16x128xi32>
    %7 = arith.cmpi eq, %5, %6 : vector<16x128xi32>
    %c1_i32_2 = arith.constant 1 : i32
    %8 = tpu.dynamic_rotate %0 by %c1_i32_2 dim 1 : vector<16x128xf32>, i32 -> vector<16x128xf32>
    %c127_i32 = arith.constant 127 : i32
    %9 = tpu.dynamic_rotate %0 by %c127_i32 dim 1 : vector<16x128xf32>, i32 -> vector<16x128xf32>
    %c1_i32_3 = arith.constant 1 : i32
    %10 = tpu.dynamic_rotate %1 by %c1_i32_3 dim 1 : vector<16x128xi32>, i32 -> vector<16x128xi32>
    %11 = arith.cmpi eq, %10, %3 : vector<16x128xi32>
    %12 = arith.select %11, %8, %9 : vector<16x128xi1>, vector<16x128xf32>
    %c0_4 = arith.constant 0 : index
    %c0_5 = arith.constant 0 : index
    %13 = memref.load %arg1[%c0_4, %c0_5] : memref<2x2xf32, #tpu.memory_space<smem>>
    %c1 = arith.constant 1 : index
    %c1_6 = arith.constant 1 : index
    %14 = memref.load %arg1[%c1, %c1_6] : memref<2x2xf32, #tpu.memory_space<smem>>
    %15 = vector.broadcast %13 : f32 to vector<16x128xf32>
    %16 = vector.broadcast %14 : f32 to vector<16x128xf32>
    %17 = arith.select %7, %15, %16 : vector<16x128xi1>, vector<16x128xf32>
    %c0_7 = arith.constant 0 : index
    %c1_8 = arith.constant 1 : index
    %18 = memref.load %arg1[%c0_7, %c1_8] : memref<2x2xf32, #tpu.memory_space<smem>>
    %c1_9 = arith.constant 1 : index
    %c0_10 = arith.constant 0 : index
    %19 = memref.load %arg1[%c1_9, %c0_10] : memref<2x2xf32, #tpu.memory_space<smem>>
    %20 = vector.broadcast %18 : f32 to vector<16x128xf32>
    %21 = vector.broadcast %19 : f32 to vector<16x128xf32>
    %22 = arith.select %7, %20, %21 : vector<16x128xi1>, vector<16x128xf32>
    %c0_11 = arith.constant 0 : index
    %23 = memref.load %arg2[%c0_11] : memref<2xf32, #tpu.memory_space<smem>>
    %c1_12 = arith.constant 1 : index
    %24 = memref.load %arg2[%c1_12] : memref<2xf32, #tpu.memory_space<smem>>
    %25 = vector.broadcast %23 : f32 to vector<16x128xf32>
    %26 = vector.broadcast %24 : f32 to vector<16x128xf32>
    %27 = arith.select %7, %25, %26 : vector<16x128xi1>, vector<16x128xf32>
    %28 = arith.mulf %17, %0 : vector<16x128xf32>
    %29 = arith.mulf %22, %12 : vector<16x128xf32>
    %30 = arith.addf %28, %29 : vector<16x128xf32>
    %31 = arith.addf %30, %27 : vector<16x128xf32>
    %cst = arith.constant 5.000000e-01 : f32
    %32 = vector.broadcast %cst : f32 to vector<16x128xf32>
    %33 = arith.mulf %32, %31 : vector<16x128xf32>
    %34 = math.tanh %33 : vector<16x128xf32>
    %cst_13 = arith.constant 5.000000e-01 : f32
    %35 = vector.broadcast %cst_13 : f32 to vector<16x128xf32>
    %36 = arith.mulf %35, %34 : vector<16x128xf32>
    %cst_14 = arith.constant 5.000000e-01 : f32
    %37 = vector.broadcast %cst_14 : f32 to vector<16x128xf32>
    %38 = arith.addf %36, %37 : vector<16x128xf32>
    %c0_15 = arith.constant 0 : index
    %c0_16 = arith.constant 0 : index
    %39 = vector.load %arg4[%c0_15, %c0_16] : memref<16x128xf32, #tpu.memory_space<vmem>>, vector<16x128xf32>
    tpu.vector_store %arg4[%c0_15, %c0_16], %38 {strides = array<i32>} : memref<16x128xf32, #tpu.memory_space<vmem>>, vector<16x128xf32>,
    return
  }
  func.func @transform_0(%arg0: i32) -> (i32, i32) {
    %c0_i32 = arith.constant 0 : i32
    %c0_i32_0 = arith.constant 0 : i32
    %c0_i32_1 = arith.constant 0 : i32
    return %c0_i32, %c0_i32_0 : i32, i32
  }
  func.func @transform_1(%arg0: i32) -> i32 {
    %c0_i32 = arith.constant 0 : i32
    %c0_i32_0 = arith.constant 0 : i32
    return %c0_i32 : i32
  }
  func.func @transform_2(%arg0: i32) -> (i32, i32) {
    %c0_i32 = arith.constant 0 : i32
    %c0_i32_0 = arith.constant 0 : i32
    return %arg0, %c0_i32 : i32, i32
  }
  func.func @transform_3(%arg0: i32) -> (i32, i32) {
    %c0_i32 = arith.constant 0 : i32
    %c0_i32_0 = arith.constant 0 : i32
    return %arg0, %c0_i32 : i32, i32
  }
}

</mosaic_0001>

<bundles_post_ra>
// kernel: net_forward.1
= control target key start
LH: loop header
LB: loop body
LE: loop exit
PB: predicated region body
PF: predicated region fallthrough
CT: control target
= control target key end

     0   :  { %8 = vsyncpa [#allocation3], 0  ;;  %s190_s0 = inlined_call_operand.vmem [shape: f32[2,2], index: 0, kind: input, shape index: {}]   ;;  %s191_s1 = inlined_call_operand.vmem [shape: f32[2], index: 1, kind: input, shape index: {}]   ;;  %s192_s2 = inlined_call_operand.vmem [shape: f32[16,128], index: 2, kind: input, shape index: {}]   ;;  %s193_s3 = inlined_call_operand.vmem [shape: f32[16,128], index: 3, kind: output, shape index: {}]  }
   0x1   :  { %s16_s14 = sshll.u32 %s190_s0, 4  ;;  %s17_s14 = int_to_ptr.vmem [resolvable:$true] %s16_s14 }
   0x2   :  { %9 = vsyncpa [#allocation5], 0  ;;  %s26_s17 = sshll.u32 %s191_s1, 4  ;;  %s110_s18 = scalar_lea.vmem %s17_s14, 32  ;;  %s27_s17 = int_to_ptr.vmem [resolvable:$true] %s26_s17 }
   0x3   :  { %p111_p0 = scmp.ne.s32.totalorder %s17_s14, %s110_s18  ;;  %p115_p1 = scmp.lt.s32.totalorder %s17_s14, %s17_s14 }
   0x4   :  { %p116_p2 = scmp.lt.s32.totalorder %s110_s18, %s110_s18 }
   0x6   :  { %p117_p3 = por %p116_p2, %p115_p1 }
   0x8   :  { %p118_p4 = pnand %p117_p3, %p111_p0 }
   0xa   :  { %121 = shalt.err (!%p118_p4)
}
   0xb   :  { %s138_s19 = smov [#allocation2]   ;;  %s122_s20 = scalar_lea.vmem %s27_s17, 16 }
   0xc   :  { %19 = dma.vmem_to_smem %s17_s14, 32, %s138_s19, [#allocation3]  }
   0xd   :  { %p123_p5 = scmp.ne.s32.totalorder %s27_s17, %s122_s20  ;;  %p127_p6 = scmp.lt.s32.totalorder %s27_s17, %s27_s17 }
   0xe   :  { %p128_p7 = scmp.lt.s32.totalorder %s122_s20, %s122_s20 }
  0x10   :  { %p129_p8 = por %p128_p7, %p127_p6 }
  0x12   :  { %p130_p9 = pnand %p129_p8, %p123_p5 }
  0x14   :  { %133 = shalt.err (!%p130_p9)
}
  0x15   :  { %s139_s0 = smov [#allocation4]  }
  0x16   :  { %29 = dma.vmem_to_smem %s27_s17, 16, %s139_s0, [#allocation5]  }
  0x17   :  { %134 = dma.done.wait [#allocation3], 32  }
  0x18   :  { %135 = vsyncadd [#allocation3], 4294967264 }
  0x19   :  { %136 = dma.done.wait [#allocation5], 16  }
  0x1a   :  { %137 = vsyncadd [#allocation5], 4294967280 }
  0x1b   :  { %38 = sfence }
  0x1c   :  { %v39_v0 = vld [vmem:[%s192_s2] sm:$0xff]  ;;  %v41_v1 = vlaneseq  ;;  %s59_s22 = sld [smem:[#allocation2]]  ;;  %v40_v2 = vld [vmem:[%s192_s2 + $0x8] sm:$0xff]  ;;  %s140_s26 = smov 1  }
  0x1d   :  { %s98_s25 = sld [smem:[#allocation2 + $0x81]]  ;;  %46 = vrot.lane.b32.xlu0 %v39_v0, %s140_s26  ;;  %48 = vrot.lane.b32.xlu1 %v40_v2, %s140_s26  ;;  %s141_s27 = smov 127  }
  0x1e   :  { %v42_v3 = vand.u32 127, %v41_v1  ;;  %s99_s2 = sld [smem:[#allocation2 + $0x1]] }
  0x1f   :  { %s100_s28 = sld [smem:[#allocation2 + $0x80]] }
  0x20   :  { %v44_v4 = vand.u32 1, %v42_v3  ;;  %s69_s29 = sld [smem:[#allocation4]]  ;;  %v43_v13 = vxor.u32 1, %v42_v3 }
  0x21   :  { %54 = vrot.lane.b32.xlu0 %v42_v3, %s140_s26  ;;  %50 = vrot.lane.b32.xlu1 %v39_v0, %s141_s27  ;;  %s101_s30 = sld [smem:[#allocation4 + $0x1]] }
  0x22   :  { %vm174_vm0 = vcmp.eq.s32.totalorder %v44_v4, 0  ;;  %v61_v6 = vstv %s59_s22 }
  0x23   :  { %v62_v7 = vstv %s98_s25 }
  0x24   :  { %v63_v8 = vsel %vm174_vm0, %v61_v6, %v62_v7  ;;  %v66_v14 = vstv %s99_s2 }
  0x25   :  { %v74_v9 = vmul.f32 %v63_v8, %v39_v0  ;;  %v75_v10 = vmul.f32 %v63_v8, %v40_v2  ;;  %52 = vrot.lane.b32.xlu0 %v40_v2, %s141_s27  ;;  %v67_v15 = vstv %s100_s28 }
  0x26   :  { %v68_v17 = vsel %vm174_vm0, %v66_v14, %v67_v15  ;;  %v71_v19 = vstv %s69_s29 }
  0x27   :  { %v72_v20 = vstv %s101_s30 }
  0x28   :  { %v73_v23 = vsel %vm174_vm0, %v71_v19, %v72_v20 }
  0x8f   :  { %v47_v11 = vpop.permute.xlu0 %46  ;;  %v49_v12 = vpop.permute.xlu1 %48 }
  0x93   :  { %v55_v16 = vpop.permute.xlu0 %54  ;;  %v51_v18 = vpop.permute.xlu1 %50 }
  0x94   :  { %vm56_vm1 = vcmp.eq.s32.totalorder %v55_v16, %v43_v13 }
  0x95   :  { %v57_v21 = vsel %vm56_vm1, %v47_v11, %v51_v18 }
  0x96   :  { %v76_v22 = vmul.f32 %v68_v17, %v57_v21 }
  0x97   :  { %v53_v24 = vpop.permute.xlu0 %52 }
  0x98   :  { %v78_v25 = vadd.f32 %v76_v22, %v74_v9  ;;  %v58_v26 = vsel %vm56_vm1, %v49_v12, %v53_v24 }
  0x99   :  { %v77_v27 = vmul.f32 %v68_v17, %v58_v26 }
  0x9a   :  { %v80_v28 = vadd.f32 %v78_v25, %v73_v23 }
  0x9b   :  { %v79_v29 = vadd.f32 %v77_v27, %v75_v10 }
  0x9c   :  { %v82_v30 = vmul.f32 0.5, %v80_v28 }
  0x9d   :  { %v81_v31 = vadd.f32 %v79_v29, %v73_v23 }
  0x9e   :  { %106 = vtanh.f32 %v82_v30 }
  0x9f   :  { %v83_v32 = vmul.f32 0.5, %v81_v31 }
  0xa1   :  { %108 = vtanh.f32 %v83_v32 }
  0xab   :  { %v107_v33 = vpop.eup %106 }
  0xac   :  { %v86_v34 = vmul.f32 0.5, %v107_v33 }
  0xae   :  { %v109_v35 = vpop.eup %108  ;;  %v88_v36 = vadd.f32 0.5, %v86_v34 }
  0xaf   :  { %v87_v37 = vmul.f32 0.5, %v109_v35 }
  0xb0   :  { %90 = vst [vmem:[%s193_s3] sm:$0xff] %v88_v36 }
  0xb1   :  { %v89_v38 = vadd.f32 0.5, %v87_v37 }
  0xb3   :  { %91 = vst [vmem:[%s193_s3 + $0x8] sm:$0xff] %v89_v38 }
  0xb4   :  { %96 = vsyncpa [#allocation3], 1 }
  0xb5   :  { %97 = vsyncpa [#allocation5], 1 }

</bundles_post_ra>
